<compile_context>
chip_gen: v7x
topology: tpu7x:2x2x1
jax: 0.10.0
libtpu: 0.0.40
codegen_flags: <defaults>
</compile_context>

<pallas_src>
import functools

import jax
import jax.numpy as jnp
from jax.experimental import pallas as pl
from jax.experimental.pallas import tpu as pltpu


_LANES_CANDIDATES = (1024, 512, 256, 128)  # lane-dense widths (multiples of 128)
_DEFAULT_LANES = 1024


def _cdiv(a, b):
    return -(-a // b)


def _round_up(a, b):
    return _cdiv(a, b) * b


def _device_kind() -> str:
    try:
        return jax.devices()[0].device_kind.lower()
    except Exception:
        return ""


def _sublane(itemsize: int) -> int:
    # Packed sublane multiple per element width: f32 -> 8, bf16/f16 -> 16, int8 -> 32.
    return max(8, 32 // max(1, itemsize))


def _log_kernel(x_ref, o_ref, *, compute_dtype):
    # Elementwise natural log on the VMEM tile.  compute_dtype is the input dtype
    # on chips with native bf16 EUP (v6e/v7x), f32 otherwise.
    x = x_ref[...]
    o_ref[...] = jnp.log(x.astype(compute_dtype)).astype(o_ref.dtype)


def log_pallas(x: jax.Array) -> jax.Array:
    """Elementwise natural log via a Pallas TPU kernel. Matches torch.log(x)."""
    orig_shape = x.shape
    in_dtype = x.dtype
    # torch.log promotes integer/bool inputs to floating point.
    out_dtype = in_dtype if jnp.issubdtype(in_dtype, jnp.floating) else jnp.float32

    total = x.size
    if total == 0:
        return jnp.zeros(orig_shape, out_dtype)

    kind = _device_kind()
    bf16_native = ("v6" in kind) or ("v7" in kind)  # v6e/v7x have bf16 VPU/EUP
    num_cores = 2 if "v7" in kind else 1            # v7x: 2 TensorCores per chip
    # 4 MiB blocks (16 MiB live w/ dbl-buffered in+out) fit the 32 MiB scoped
    # default on v6e/v7x; keep 2 MiB (8 MiB live) on v5e's 16 MiB default.
    target_block_bytes = (4 << 20) if bf16_native else (2 << 20)

    if in_dtype == jnp.bfloat16 and bf16_native:
        compute_dtype = jnp.bfloat16     # native bf16 log on v6e/v7x
    else:
        compute_dtype = jnp.float32      # f32 path for f32, and for bf16/f16/int on older chips

    itemsize = jnp.dtype(in_dtype).itemsize
    sublane = _sublane(itemsize)

    flat = x.reshape(-1)

    # Fast path: a lane width that divides the flat length -> free reshape, no pad/slice.
    lanes = None
    for w in _LANES_CANDIDATES:
        if total % w == 0:
            lanes = w
            break

    padded = False
    if lanes is None:
        # Ragged fallback: minimal, dtype-aware pad (value 1 -> log(1)=0, never NaN/-inf).
        # TODO(synk): replace with in-kernel partial-last-block masking to avoid the extra HBM pass.
        lanes = _DEFAULT_LANES
        pad_unit = sublane * lanes
        total_padded = _round_up(total, pad_unit)
        flat = jnp.pad(flat, (0, total_padded - total), constant_values=1)
        padded = True
    else:
        total_padded = total

    rows = total_padded // lanes
    x2d = flat.reshape(rows, lanes)

    # Constant-byte row tile across dtypes.
    target_rows = max(sublane, (target_block_bytes // (lanes * itemsize)) // sublane * sublane)

    if num_cores >= 2 and rows >= 2 * sublane:
        # Ensure an even number (>= 2) of grid steps so the parallel axis spans both TCs (v7x).
        steps = max(2, 2 * _cdiv(rows, 2 * target_rows))
        tm = min(_round_up(_cdiv(rows, steps), sublane), _round_up(rows, sublane))
    elif rows <= target_rows:
        tm = rows                    # single block equal to the full array dim (always legal)
    else:
        tm = target_rows             # multiple of sublane; partial last block masked by Pallas

    grid = (_cdiv(rows, tm),)

    out_itemsize = jnp.dtype(out_dtype).itemsize
    cost = pl.CostEstimate(
        flops=0,
        transcendentals=total_padded,
        bytes_accessed=total_padded * (itemsize + out_itemsize),
    )

    kernel = functools.partial(_log_kernel, compute_dtype=compute_dtype)

    out2d = pl.pallas_call(
        kernel,
        out_shape=jax.ShapeDtypeStruct((rows, lanes), out_dtype),
        grid_spec=pl.GridSpec(
            grid=grid,
            in_specs=[pl.BlockSpec((tm, lanes), lambda i: (i, 0))],
            out_specs=pl.BlockSpec((tm, lanes), lambda i: (i, 0)),
        ),
        compiler_params=pltpu.CompilerParams(
            dimension_semantics=("parallel",),
        ),
        cost_estimate=cost,
    )(x2d)

    if padded:
        return out2d.reshape(-1)[:total].reshape(orig_shape)
    return out2d.reshape(orig_shape)


if __name__ == "__main__":
    key = jax.random.PRNGKey(0)
    # Small NCHW input; positive values so log is well-defined (matches typical
    # usage of torch.log on probabilities/activations).
    x = jax.random.uniform(
        key, (2, 4, 16, 16), dtype=jnp.float32, minval=0.1, maxval=2.0
    )

    y = log_pallas(x)
    jax.block_until_ready(y)

    # Sanity check against plain JAX reference.
    y_ref = jnp.log(x)
    assert y.shape == x.shape and y.dtype == x.dtype
    assert jnp.allclose(y, y_ref, atol=1e-6, rtol=1e-6)

    print("KERNEL_OK")
</pallas_src>

<mosaic_0001>
module attributes {stable_mosaic.version = 11 : i64} {
  func.func @_log_kernel(%arg0: i32, %arg1: memref<2x1024xf32, #tpu.memory_space<vmem>>, %arg2: memref<2x1024xf32, #tpu.memory_space<vmem>>) attributes {dimension_semantics = [#tpu.dimension_semantics<parallel>], iteration_bounds = array<i64: 1>, scalar_prefetch = 0 : i64, scratch_operands = 0 : i64, tpu.core_type = #tpu.core_type<tc>, window_params = [{transform_indices = @transform_0, window_bounds = array<i64: 2, 1024>}, {transform_indices = @transform_1, window_bounds = array<i64: 2, 1024>}]} {
    %c0 = arith.constant 0 : index
    %c0_0 = arith.constant 0 : index
    %0 = vector.load %arg1[%c0, %c0_0] : memref<2x1024xf32, #tpu.memory_space<vmem>>, vector<2x1024xf32>
    %1 = math.log %0 : vector<2x1024xf32>
    %c0_1 = arith.constant 0 : index
    %c0_2 = arith.constant 0 : index
    %2 = vector.load %arg2[%c0_1, %c0_2] : memref<2x1024xf32, #tpu.memory_space<vmem>>, vector<2x1024xf32>
    tpu.vector_store %arg2[%c0_1, %c0_2], %1 {strides = array<i32>} : memref<2x1024xf32, #tpu.memory_space<vmem>>, vector<2x1024xf32>,
    return
  }
  func.func @transform_0(%arg0: i32) -> (i32, i32) {
    %c0_i32 = arith.constant 0 : i32
    %c0_i32_0 = arith.constant 0 : i32
    return %arg0, %c0_i32 : i32, i32
  }
  func.func @transform_1(%arg0: i32) -> (i32, i32) {
    %c0_i32 = arith.constant 0 : i32
    %c0_i32_0 = arith.constant 0 : i32
    return %arg0, %c0_i32 : i32, i32
  }
}

</mosaic_0001>

<bundles_post_ra>
// kernel: tpu_custom_call.1
= control target key start
LH: loop header
LB: loop body
LE: loop exit
PB: predicated region body
PF: predicated region fallthrough
CT: control target
= control target key end

     0   :  { %6 = vsyncpa [#allocation3], 0  ;;  %s134_s0 = inlined_call_operand.hbm [shape: f32[2,1024], index: 0, kind: input, shape index: {}]   ;;  %s135_s1 = inlined_call_operand.hbm [shape: f32[2,1024], index: 1, kind: output, shape index: {}]  }
   0x1   :  { %7 = vsyncpa [#allocation4], 0  ;;  %s98_s6 = smov [#allocation2]   ;;  %s50_s10 = scalar_lea.hbm %s134_s0, 256 }
   0x2   :  { %s14_s7 = sshll.u32 %s98_s6, 4  ;;  %p51_p0 = scmp.ne.s32.totalorder %s134_s0, %s50_s10  ;;  %s15_s7 = int_to_ptr.vmem [resolvable:$true] %s14_s7 }
   0x3   :  { %p54_p1 = scmp.lt.u32.totalorder %s50_s10, %s134_s0 }
   0x5   :  { %p56_p2 = pnand %p54_p1, %p51_p0 }
   0x7   :  { %59 = shalt.err (!%p56_p2)
}
   0x8   :  { %s60_s15 = scalar_lea.vmem %s15_s7, 256  ;;  %p65_p4 = scmp.lt.s32.totalorder %s15_s7, %s15_s7 }
   0x9   :  { %p61_p3 = scmp.ne.s32.totalorder %s15_s7, %s60_s15  ;;  %p66_p5 = scmp.lt.s32.totalorder %s60_s15, %s60_s15 }
   0xb   :  { %p67_p6 = por %p66_p5, %p65_p4 }
   0xd   :  { %p68_p7 = pnand %p67_p6, %p61_p3 }
   0xf   :  { %71 = shalt.err (!%p68_p7)
}
  0x10   :  { %17 = dma.hbm_to_vmem [thread:$0]  %s134_s0, 256, %s15_s7, [#allocation3]  }
  0x11   :  { %94 = dma.done.wait [#allocation3], 256  }
  0x12   :  { %95 = vsyncadd [#allocation3], 4294967040  ;;  %v21_v0 = vld [vmem:[#allocation2] sm:$0xff]  ;;  %v22_v1 = vld [vmem:[#allocation2 + $0x8] sm:$0xff]  ;;  %s99_s18 = smov [#allocation5]  }
  0x13   :  { %46 = vlog2.f32 %v21_v0  ;;  %s35_s19 = sshll.u32 %s99_s18, 4  ;;  %s36_s19 = int_to_ptr.vmem [resolvable:$true] %s35_s19 }
  0x14   :  { %48 = vlog2.f32 %v22_v1  ;;  %s72_s20 = scalar_lea.vmem %s36_s19, 256  ;;  %p77_p9 = scmp.lt.s32.totalorder %s36_s19, %s36_s19 }
  0x15   :  { %p73_p8 = scmp.ne.s32.totalorder %s36_s19, %s72_s20  ;;  %p78_p10 = scmp.lt.s32.totalorder %s72_s20, %s72_s20 }
  0x17   :  { %p79_p11 = por %p78_p10, %p77_p9 }
  0x19   :  { %p80_p12 = pnand %p79_p11, %p73_p8 }
  0x1d   :  { %v47_v2 = vpop.eup %46 }
  0x1e   :  { %v49_v3 = vpop.eup %48  ;;  %v24_v4 = vmul.f32 0.6931472, %v47_v2 }
  0x1f   :  { %v26_v5 = vmul.f32 0.6931472, %v49_v3 }
  0x20   :  { %27 = vst [vmem:[#allocation5] sm:$0xff] %v24_v4 }
  0x21   :  { %28 = vst [vmem:[#allocation5 + $0x8] sm:$0xff] %v26_v5 }
  0x22   :  { %83 = shalt.err (!%p80_p12)
}
  0x23   :  { %s84_s22 = scalar_lea.hbm %s135_s1, 256 }
  0x24   :  { %p85_p13 = scmp.ne.s32.totalorder %s135_s1, %s84_s22  ;;  %p88_p0 = scmp.lt.u32.totalorder %s84_s22, %s135_s1 }
  0x26   :  { %p90_p1 = pnand %p88_p0, %p85_p13 }
  0x28   :  { %93 = shalt.err (!%p90_p1)
}
  0x29   :  { %38 = dma.vmem_to_hbm [thread:$0]  %s36_s19, 256, %s135_s1, [#allocation4]  }
  0x2a   :  { %96 = dma.done.wait [#allocation4], 256  }
  0x2b   :  { %97 = vsyncadd [#allocation4], 4294967040 }
  0x2c   :  { %42 = vsyncpa [#allocation3], 1 }
  0x2d   :  { %43 = vsyncpa [#allocation4], 1 }

</bundles_post_ra>
